<compile_context>
chip_gen: v5e
topology: v5e:2x2
jax: 0.10.0
libtpu: 0.0.40
codegen_flags: <defaults>
</compile_context>

<pallas_src>
import numpy as np
import jax
import jax.numpy as jnp
from jax.experimental import pallas as pl

# --- replicate CharsDataset vocabulary size deterministically -------------
_global_var_text = [
    'Как я отмечал во введении, простейшая НС – персептрон, представляет собой ...',
    'Это классический пример полносвязной сети ...',
    'Каждая связь между нейронами имеет определенный ...',
]
_all_text = ''.join(_global_var_text)
N_CHARS = len(set(_all_text.lower()))      # == CharsDataset().count
HIDDEN = 32
PREV_CHARS = 10                            # sequence length used by the dataset


# --- Pallas kernel ----------------------------------------------------------
def chars_rnn_kernel(x2d_ref, wih_ref, whh_ref, b_ref, wlin_ref, blin_ref,
                     out_ref):
    """Single invocation: batched input projection + fully-unrolled recurrence.

    x2d_ref : (T*Bp, C)  time-major, batch-padded one-hot input (timestep t
                         occupies rows [t*Bp, (t+1)*Bp))
    wih_ref : (C, H)   = W_ih^T
    whh_ref : (H, H)   = W_hh^T
    b_ref   : (1, H)   = b_ih + b_hh
    wlin_ref: (H, Cp)  = W_lin^T, lane-padded to Cp
    blin_ref: (1, Cp)  = b_lin,   lane-padded to Cp
    out_ref : (Bp, Cp) logits (padded)
    """
    Bp = out_ref.shape[0]
    T = x2d_ref.shape[0] // Bp
    H = whh_ref.shape[0]

    # One batched MXU call for all timesteps (hoisted off the serial path):
    #   xw[t*Bp:(t+1)*Bp] = x_t @ W_ih^T + (b_ih + b_hh)
    xw = (jnp.dot(x2d_ref[...], wih_ref[...],
                  preferred_element_type=jnp.float32)
          + b_ref[...])                                   # (T*Bp, H)

    whh = whh_ref[...]                                    # (H, H), resident
    h = jnp.zeros((Bp, H), jnp.float32)
    # T is tiny and static -> fully unroll the recurrence.
    for t in range(T):
        h = jnp.tanh(xw[t * Bp:(t + 1) * Bp, :]
                     + jnp.dot(h, whh, preferred_element_type=jnp.float32))

    out_ref[...] = (jnp.dot(h, wlin_ref[...],
                            preferred_element_type=jnp.float32)
                    + blin_ref[...])


def chars_model_forward(x, params):
    """x: (B, T, C) float32 one-hot. Returns (B, C) logits, identical to
    CharsModel.forward(x) semantics."""
    B, T, C = x.shape
    H = HIDDEN
    Bp = ((B + 7) // 8) * 8          # sublane-pad batch to a multiple of 8
    Cp = ((C + 127) // 128) * 128    # lane-pad output width to a multiple of 128

    # Pre-transpose weights so the kernel does plain row-major matmuls;
    # pre-sum the two RNN biases; lane-pad the head weights/bias.
    wih_t = params['w_ih'].T                                     # (C, H)
    whh_t = params['w_hh'].T                                     # (H, H)
    b = (params['b_ih'] + params['b_hh']).reshape(1, H)          # (1, H)
    wlin_t = jnp.zeros((H, Cp), jnp.float32).at[:, :C].set(params['w_lin'].T)
    blin = jnp.zeros((1, Cp), jnp.float32).at[:, :C].set(
        params['b_lin'].reshape(1, C))

    # Time-major, batch-padded, flattened to (T*Bp, C). Padded batch rows are
    # zero one-hots; their hidden state is computed but sliced away below.
    x_tm = jnp.transpose(x, (1, 0, 2))                           # (T, B, C)
    if Bp > B:
        x_tm = jnp.pad(x_tm, ((0, 0), (0, Bp - B), (0, 0)))
    x2d = x_tm.reshape(T * Bp, C)

    # No grid: all operands (a few KiB total) map fully into VMEM and the
    # whole forward pass runs in a single kernel invocation.
    out_p = pl.pallas_call(
        chars_rnn_kernel,
        out_shape=jax.ShapeDtypeStruct((Bp, Cp), jnp.float32),
    )(x2d, wih_t, whh_t, b, wlin_t, blin)

    return out_p[:B, :C]


# --- pure-JAX reference (for correctness check) ----------------------------
def chars_model_ref(x, params):
    B, T, C = x.shape

    def step(h, x_t):
        h_new = jnp.tanh(x_t @ params['w_ih'].T + params['b_ih']
                         + h @ params['w_hh'].T + params['b_hh'])
        return h_new, None

    h0 = jnp.zeros((B, HIDDEN), jnp.float32)
    h_T, _ = jax.lax.scan(step, h0, jnp.transpose(x, (1, 0, 2)))
    return h_T @ params['w_lin'].T + params['b_lin']


# --- deterministic parameter init ------------------------------------------
def init_params(key):
    ks = jax.random.split(key, 6)
    s = 1.0 / np.sqrt(HIDDEN)
    return {
        'w_ih':  jax.random.uniform(ks[0], (HIDDEN, N_CHARS), jnp.float32, -s, s),
        'w_hh':  jax.random.uniform(ks[1], (HIDDEN, HIDDEN), jnp.float32, -s, s),
        'b_ih':  jax.random.uniform(ks[2], (HIDDEN,), jnp.float32, -s, s),
        'b_hh':  jax.random.uniform(ks[3], (HIDDEN,), jnp.float32, -s, s),
        'w_lin': jax.random.uniform(ks[4], (N_CHARS, HIDDEN), jnp.float32, -s, s),
        'b_lin': jax.random.uniform(ks[5], (N_CHARS,), jnp.float32, -s, s),
    }


if __name__ == "__main__":
    key = jax.random.PRNGKey(0)
    pkey, xkey = jax.random.split(key)
    params = init_params(pkey)

    # Inputs mirror the dataset: batch of one-hot char sequences,
    # shape (B, prev_chars, n_chars).
    B, T, C = 2, PREV_CHARS, N_CHARS
    codes = jax.random.randint(xkey, (B, T), 0, C)
    x = jnp.eye(C, dtype=jnp.float32)[codes]          # (B, T, C) one-hot

    out = chars_model_forward(x, params)
    out = jax.block_until_ready(out)

    ref = jax.block_until_ready(chars_model_ref(x, params))
    assert out.shape == (B, C)
    assert np.allclose(np.asarray(out), np.asarray(ref), atol=1e-4, rtol=1e-4)

    print("KERNEL_OK")
</pallas_src>

<mosaic_0001>
module attributes {stable_mosaic.version = 11 : i64} {
  func.func @chars_rnn_kernel(%arg0: memref<80x29xf32, #tpu.memory_space<vmem>>, %arg1: memref<29x32xf32, #tpu.memory_space<vmem>>, %arg2: memref<32x32xf32, #tpu.memory_space<vmem>>, %arg3: memref<1x32xf32, #tpu.memory_space<vmem>>, %arg4: memref<32x128xf32, #tpu.memory_space<vmem>>, %arg5: memref<1x128xf32, #tpu.memory_space<vmem>>, %arg6: memref<8x128xf32, #tpu.memory_space<vmem>>) attributes {dimension_semantics = [], scalar_prefetch = 0 : i64, scratch_operands = 0 : i64, tpu.core_type = #tpu.core_type<tc>} {
    %c0 = arith.constant 0 : index
    %c0_0 = arith.constant 0 : index
    %0 = vector.load %arg0[%c0, %c0_0] : memref<80x29xf32, #tpu.memory_space<vmem>>, vector<80x29xf32>
    %c0_1 = arith.constant 0 : index
    %c0_2 = arith.constant 0 : index
    %1 = vector.load %arg1[%c0_1, %c0_2] : memref<29x32xf32, #tpu.memory_space<vmem>>, vector<29x32xf32>
    %cst = arith.constant dense<0.000000e+00> : vector<80x32xf32>
    %2 = tpu.matmul %0, %1, %cst {dimension_numbers = #tpu.dot_dimension_numbers<[1], [0], [0], [1], [0, 0, 1, 1], [], []>} : vector<80x29xf32>, vector<29x32xf32>, vector<80x32xf32> -> vector<80x32xf32>
    %c0_3 = arith.constant 0 : index
    %c0_4 = arith.constant 0 : index
    %3 = vector.load %arg3[%c0_3, %c0_4] : memref<1x32xf32, #tpu.memory_space<vmem>>, vector<1x32xf32>
    %4 = vector.broadcast %3 : vector<1x32xf32> to vector<80x32xf32>
    %5 = arith.addf %2, %4 : vector<80x32xf32>
    %c0_5 = arith.constant 0 : index
    %c0_6 = arith.constant 0 : index
    %6 = vector.load %arg2[%c0_5, %c0_6] : memref<32x32xf32, #tpu.memory_space<vmem>>, vector<32x32xf32>
    %cst_7 = arith.constant 0.000000e+00 : f32
    %7 = vector.broadcast %cst_7 : f32 to vector<8x32xf32>
    %8 = vector.extract_strided_slice %5 {offsets = [0, 0], sizes = [8, 32], strides = [1, 1]} : vector<80x32xf32> to vector<8x32xf32>
    %cst_8 = arith.constant dense<0.000000e+00> : vector<8x32xf32>
    %9 = tpu.matmul %7, %6, %cst_8 {dimension_numbers = #tpu.dot_dimension_numbers<[1], [0], [0], [1], [0, 0, 1, 1], [], []>} : vector<8x32xf32>, vector<32x32xf32>, vector<8x32xf32> -> vector<8x32xf32>
    %10 = arith.addf %8, %9 : vector<8x32xf32>
    %11 = math.tanh %10 : vector<8x32xf32>
    %12 = vector.extract_strided_slice %5 {offsets = [8, 0], sizes = [8, 32], strides = [1, 1]} : vector<80x32xf32> to vector<8x32xf32>
    %cst_9 = arith.constant dense<0.000000e+00> : vector<8x32xf32>
    %13 = tpu.matmul %11, %6, %cst_9 {dimension_numbers = #tpu.dot_dimension_numbers<[1], [0], [0], [1], [0, 0, 1, 1], [], []>} : vector<8x32xf32>, vector<32x32xf32>, vector<8x32xf32> -> vector<8x32xf32>
    %14 = arith.addf %12, %13 : vector<8x32xf32>
    %15 = math.tanh %14 : vector<8x32xf32>
    %16 = vector.extract_strided_slice %5 {offsets = [16, 0], sizes = [8, 32], strides = [1, 1]} : vector<80x32xf32> to vector<8x32xf32>
    %cst_10 = arith.constant dense<0.000000e+00> : vector<8x32xf32>
    %17 = tpu.matmul %15, %6, %cst_10 {dimension_numbers = #tpu.dot_dimension_numbers<[1], [0], [0], [1], [0, 0, 1, 1], [], []>} : vector<8x32xf32>, vector<32x32xf32>, vector<8x32xf32> -> vector<8x32xf32>
    %18 = arith.addf %16, %17 : vector<8x32xf32>
    %19 = math.tanh %18 : vector<8x32xf32>
    %20 = vector.extract_strided_slice %5 {offsets = [24, 0], sizes = [8, 32], strides = [1, 1]} : vector<80x32xf32> to vector<8x32xf32>
    %cst_11 = arith.constant dense<0.000000e+00> : vector<8x32xf32>
    %21 = tpu.matmul %19, %6, %cst_11 {dimension_numbers = #tpu.dot_dimension_numbers<[1], [0], [0], [1], [0, 0, 1, 1], [], []>} : vector<8x32xf32>, vector<32x32xf32>, vector<8x32xf32> -> vector<8x32xf32>
    %22 = arith.addf %20, %21 : vector<8x32xf32>
    %23 = math.tanh %22 : vector<8x32xf32>
    %24 = vector.extract_strided_slice %5 {offsets = [32, 0], sizes = [8, 32], strides = [1, 1]} : vector<80x32xf32> to vector<8x32xf32>
    %cst_12 = arith.constant dense<0.000000e+00> : vector<8x32xf32>
    %25 = tpu.matmul %23, %6, %cst_12 {dimension_numbers = #tpu.dot_dimension_numbers<[1], [0], [0], [1], [0, 0, 1, 1], [], []>} : vector<8x32xf32>, vector<32x32xf32>, vector<8x32xf32> -> vector<8x32xf32>
    %26 = arith.addf %24, %25 : vector<8x32xf32>
    %27 = math.tanh %26 : vector<8x32xf32>
    %28 = vector.extract_strided_slice %5 {offsets = [40, 0], sizes = [8, 32], strides = [1, 1]} : vector<80x32xf32> to vector<8x32xf32>
    %cst_13 = arith.constant dense<0.000000e+00> : vector<8x32xf32>
    %29 = tpu.matmul %27, %6, %cst_13 {dimension_numbers = #tpu.dot_dimension_numbers<[1], [0], [0], [1], [0, 0, 1, 1], [], []>} : vector<8x32xf32>, vector<32x32xf32>, vector<8x32xf32> -> vector<8x32xf32>
    %30 = arith.addf %28, %29 : vector<8x32xf32>
    %31 = math.tanh %30 : vector<8x32xf32>
    %32 = vector.extract_strided_slice %5 {offsets = [48, 0], sizes = [8, 32], strides = [1, 1]} : vector<80x32xf32> to vector<8x32xf32>
    %cst_14 = arith.constant dense<0.000000e+00> : vector<8x32xf32>
    %33 = tpu.matmul %31, %6, %cst_14 {dimension_numbers = #tpu.dot_dimension_numbers<[1], [0], [0], [1], [0, 0, 1, 1], [], []>} : vector<8x32xf32>, vector<32x32xf32>, vector<8x32xf32> -> vector<8x32xf32>
    %34 = arith.addf %32, %33 : vector<8x32xf32>
    %35 = math.tanh %34 : vector<8x32xf32>
    %36 = vector.extract_strided_slice %5 {offsets = [56, 0], sizes = [8, 32], strides = [1, 1]} : vector<80x32xf32> to vector<8x32xf32>
    %cst_15 = arith.constant dense<0.000000e+00> : vector<8x32xf32>
    %37 = tpu.matmul %35, %6, %cst_15 {dimension_numbers = #tpu.dot_dimension_numbers<[1], [0], [0], [1], [0, 0, 1, 1], [], []>} : vector<8x32xf32>, vector<32x32xf32>, vector<8x32xf32> -> vector<8x32xf32>
    %38 = arith.addf %36, %37 : vector<8x32xf32>
    %39 = math.tanh %38 : vector<8x32xf32>
    %40 = vector.extract_strided_slice %5 {offsets = [64, 0], sizes = [8, 32], strides = [1, 1]} : vector<80x32xf32> to vector<8x32xf32>
    %cst_16 = arith.constant dense<0.000000e+00> : vector<8x32xf32>
    %41 = tpu.matmul %39, %6, %cst_16 {dimension_numbers = #tpu.dot_dimension_numbers<[1], [0], [0], [1], [0, 0, 1, 1], [], []>} : vector<8x32xf32>, vector<32x32xf32>, vector<8x32xf32> -> vector<8x32xf32>
    %42 = arith.addf %40, %41 : vector<8x32xf32>
    %43 = math.tanh %42 : vector<8x32xf32>
    %44 = vector.extract_strided_slice %5 {offsets = [72, 0], sizes = [8, 32], strides = [1, 1]} : vector<80x32xf32> to vector<8x32xf32>
    %cst_17 = arith.constant dense<0.000000e+00> : vector<8x32xf32>
    %45 = tpu.matmul %43, %6, %cst_17 {dimension_numbers = #tpu.dot_dimension_numbers<[1], [0], [0], [1], [0, 0, 1, 1], [], []>} : vector<8x32xf32>, vector<32x32xf32>, vector<8x32xf32> -> vector<8x32xf32>
    %46 = arith.addf %44, %45 : vector<8x32xf32>
    %47 = math.tanh %46 : vector<8x32xf32>
    %c0_18 = arith.constant 0 : index
    %c0_19 = arith.constant 0 : index
    %48 = vector.load %arg4[%c0_18, %c0_19] : memref<32x128xf32, #tpu.memory_space<vmem>>, vector<32x128xf32>
    %cst_20 = arith.constant dense<0.000000e+00> : vector<8x128xf32>
    %49 = tpu.matmul %47, %48, %cst_20 {dimension_numbers = #tpu.dot_dimension_numbers<[1], [0], [0], [1], [0, 0, 1, 1], [], []>} : vector<8x32xf32>, vector<32x128xf32>, vector<8x128xf32> -> vector<8x128xf32>
    %c0_21 = arith.constant 0 : index
    %c0_22 = arith.constant 0 : index
    %50 = vector.load %arg5[%c0_21, %c0_22] : memref<1x128xf32, #tpu.memory_space<vmem>>, vector<1x128xf32>
    %51 = vector.broadcast %50 : vector<1x128xf32> to vector<8x128xf32>
    %52 = arith.addf %49, %51 : vector<8x128xf32>
    %c0_23 = arith.constant 0 : index
    %c0_24 = arith.constant 0 : index
    %53 = vector.load %arg6[%c0_23, %c0_24] : memref<8x128xf32, #tpu.memory_space<vmem>>, vector<8x128xf32>
    tpu.vector_store %arg6[%c0_23, %c0_24], %52 {strides = array<i32>} : memref<8x128xf32, #tpu.memory_space<vmem>>, vector<8x128xf32>,
    return
  }
}

</mosaic_0001>

<bundles_post_ra>
// kernel: tpu_custom_call.1
= control target key start
LH: loop header
LB: loop body
LE: loop exit
PB: predicated region body
PF: predicated region fallthrough
CT: control target
= control target key end

     0   :  { %vm73_vm0 = vcmask 1044480   ;;  %s704_s0 = inlined_call_operand.vmem [shape: f32[80,29], index: 0, kind: input, shape index: {}]   ;;  %s705_s1 = inlined_call_operand.vmem [shape: f32[29,32], index: 1, kind: input, shape index: {}]   ;;  %s706_s2 = inlined_call_operand.vmem [shape: f32[32,32], index: 2, kind: input, shape index: {}]   ;;  %s707_s3 = inlined_call_operand.vmem [shape: f32[1,32], index: 3, kind: input, shape index: {}]   ;;  %s708_s4 = inlined_call_operand.vmem [shape: f32[32,128], index: 4, kind: input, shape index: {}]   ;;  %s709_s5 = inlined_call_operand.vmem [shape: f32[1,128], index: 5, kind: input, shape index: {}]   ;;  %s710_s6 = inlined_call_operand.hbm [shape: f32[8,128], index: 6, kind: output, shape index: {}]  }
   0x1   :  { %v37_v0 = vld [vmem:[%s705_s1 + $0x18] sm:$0x1f]  ;;  %v36_v1 = vld [vmem:[%s705_s1 + $0x10] sm:$0xff]  ;;  %v35_v3 = vld [vmem:[%s705_s1 + $0x8] sm:$0xff] }
   0x2   :  { %448 = vmatpush.msk.msra.mxu1 %vm73_vm0, %v37_v0  ;;  %427 = vmatpush.msk.msra.mxu0 %vm73_vm0, %v37_v0  ;;  %v552_v2 = vld [vmem:[%s706_s2 + $0x18] sm:$0xff]  ;;  %v561_v4 = vld [vmem:[%s706_s2 + $0x10] sm:$0xff]  ;;  %v34_v5 = vld [vmem:[%s705_s1] sm:$0xff] }
   0x3   :  { %169 = vmatpush.msra.mxu2 %v552_v2  ;;  %449 = vmatpush.msk.msra.mxu3 %vm73_vm0, %v37_v0 }
   0x4   :  { %450 = vmatpush.msra.mxu1 %v36_v1  ;;  %90 = vmatpush.msra.mxu0 %v36_v1 }
   0x5   :  { %170 = vmatpush.msra.mxu2 %v561_v4  ;;  %451 = vmatpush.msra.mxu3 %v36_v1 }
   0x6   :  { %11 = vsyncpa [#allocation3], 0  ;;  %452 = vmatpush.msra.mxu1 %v35_v3  ;;  %v30_v6 = vld [vmem:[%s704_s0 + $0x30] sm:$0xff]  ;;  %vm42_vm1 = vcmask 236544   ;;  %91 = vmatpush.msra.mxu0 %v35_v3  ;;  %v573_v7 = vld [vmem:[%s706_s2 + $0x8] sm:$0xff]  ;;  %v506_v10 = vmov 0.0  }
   0x7   :  { %v24_v8 = vld [vmem:[%s704_s0] sm:$0xff]  ;;  %171 = vmatpush.msra.mxu2 %v573_v7  ;;  %453 = vmatpush.msra.mxu3 %v35_v3  ;;  %v25_v11 = vld [vmem:[%s704_s0 + $0x8] sm:$0xff]  ;;  %v31_v12 = vld [vmem:[%s704_s0 + $0x38] sm:$0xff]  ;;  %vm128_vm2 = vcmask 261120  }
   0x8   :  { %454 = vmatpush.msra.mxu1 %v34_v5  ;;  %92 = vmatpush.msra.mxu0 %v34_v5  ;;  %v584_v9 = vld [vmem:[%s706_s2] sm:$0xff]  ;;  %v33_v21 = vld [vmem:[%s704_s0 + $0x48] sm:$0xff]  ;;  %v26_v22 = vld [vmem:[%s704_s0 + $0x10] sm:$0xff]  ;;  %s507_s2 = smov [#allocation2]  }
   0x9   :  { %434 = vmatmul.msk.f32.vlgmr.msra.gmra.mxu1 %vm42_vm1, %v30_v6  ;;  %428 = vmatmul.msk.f32.vlgmr.msra.gmra.mxu0 %vm42_vm1, %v24_v8  ;;  %v32_v13 = vld [vmem:[%s704_s0 + $0x40] sm:$0xff]  ;;  %v27_v29 = vld [vmem:[%s704_s0 + $0x18] sm:$0xff]  ;;  %v29_v43 = vld [vmem:[%s704_s0 + $0x28] sm:$0xff]  ;;  %s416_s16 = sshll.u32 %s507_s2, 4  ;;  %s417_s16 = int_to_ptr.vmem [resolvable:$true] %s416_s16 }
   0xa   :  { %144 = vmatpush.msrb.mxu1 %v552_v2  ;;  %172 = vmatpush.msra.mxu2 %v584_v9  ;;  %v628_v16 = vld [vmem:[%s707_s3] ss:$0 sm:$0xff]  ;;  %v381_v3 = vld [vmem:[%s708_s4 + $0x10] sm:$0xff] }
   0xb   :  { %455 = vmatpush.msra.mxu3 %v34_v5  ;;  %v28_v37 = vld [vmem:[%s704_s0 + $0x20] sm:$0xff] }
   0xc   :  { %244 = vmatpush.msrb.mxu2 %v552_v2  ;;  %145 = vmatpush.msrb.mxu1 %v561_v4  ;;  %v379_v5 = vld [vmem:[%s708_s4] sm:$0xff] }
   0xd   :  { %194 = vmatpush.msrb.mxu3 %v552_v2 }
   0xe   :  { %245 = vmatpush.msrb.mxu2 %v561_v4  ;;  %146 = vmatpush.msrb.mxu1 %v573_v7 }
   0xf   :  { %195 = vmatpush.msrb.mxu3 %v561_v4 }
  0x10   :  { %246 = vmatpush.msrb.mxu2 %v573_v7  ;;  %147 = vmatpush.msrb.mxu1 %v584_v9 }
  0x11   :  { %196 = vmatpush.msrb.mxu3 %v573_v7  ;;  %148 = vmatmul.f32.vlgmr.msrb.gmra.mxu1 %v506_v10  ;;  %v459_v10 = vld [vmem:[%s709_s5] ss:$0 sm:$0xff] }
  0x12   :  { %247 = vmatpush.msrb.mxu2 %v584_v9  ;;  %219 = vmatpush.msra.mxu1 %v552_v2 }
  0x13   :  { %197 = vmatpush.msrb.mxu3 %v584_v9  ;;  %429 = vmatmul.msk.f32.gmra.mxu0 %vm42_vm1, %v25_v11 }
  0x14   :  { %220 = vmatpush.msra.mxu1 %v561_v4  ;;  %435 = vmatmul.msk.f32.vlgmr.msra.gmra.mxu3 %vm42_vm1, %v31_v12 }
  0x15   :  { %269 = vmatpush.msra.mxu3 %v552_v2 }
  0x16   :  { %221 = vmatpush.msra.mxu1 %v573_v7 }
  0x17   :  { %270 = vmatpush.msra.mxu3 %v561_v4 }
  0x18   :  { %222 = vmatpush.msra.mxu1 %v584_v9 }
  0x19   :  { %271 = vmatpush.msra.mxu3 %v573_v7 }
  0x1a   :  { %294 = vmatpush.msrb.mxu1 %v552_v2 }
  0x1b   :  { %272 = vmatpush.msra.mxu3 %v584_v9  ;;  %430 = vmatmul.msk.f32.gmra.mxu0 %vm42_vm1, %v26_v22 }
  0x1c   :  { %295 = vmatpush.msrb.mxu1 %v561_v4  ;;  %436 = vmatmul.msk.f32.gmra.mxu3 %vm42_vm1, %v32_v13 }
  0x1e   :  { %296 = vmatpush.msrb.mxu1 %v573_v7 }
  0x20   :  { %297 = vmatpush.msrb.mxu1 %v584_v9 }
  0x23   :  { %431 = vmatmul.msk.f32.gmra.mxu0 %vm42_vm1, %v27_v29 }
  0x24   :  { %437 = vmatmul.msk.f32.gmra.mxu3 %vm42_vm1, %v33_v21 }
  0x2b   :  { %432 = vmatmul.msk.f32.gmra.mxu0 %vm42_vm1, %v28_v37 }
  0x33   :  { %433 = vmatmul.msk.f32.gmra.mxu0 %vm42_vm1, %v29_v43 }
  0x86   :  { %v623_v14 = vpop.f32.mrf.mxu1  ;;  %v94_v15 = vpop.f32.mrf.mxu0 }
  0x87   :  { %v95_v17 = vadd.f32 %v628_v16, %v94_v15  ;;  %v113_v54 = vadd.f32 %v628_v16, %v623_v14 }
  0x8e   :  { %v149_v18 = vpop.f32.mrf.mxu1 }
  0x8f   :  { %v152_v19 = vadd.f32 %v149_v18, %v95_v17 }
  0x90   :  { %v97_v23 = vpop.f32.mrf.mxu0 }
  0x91   :  { %460 = vtanh.f32 %v152_v19  ;;  %v98_v24 = vadd.f32 %v628_v16, %v97_v23 }
  0x97   :  { %v461_v20 = vpop.eup %460  ;;  %v115_v28 = vpop.f32.mrf.mxu3 }
  0x98   :  { %438 = vmatmul.msk.f32.vlgmr.msra.gmra.mxu2 %vm128_vm2, %v461_v20  ;;  %v100_v32 = vpop.f32.mrf.mxu0  ;;  %v116_v58 = vadd.f32 %v628_v16, %v115_v28 }
  0x99   :  { %319 = vmatpush.msra.mxu2 %v552_v2  ;;  %v101_v33 = vadd.f32 %v628_v16, %v100_v32 }
  0x9b   :  { %320 = vmatpush.msra.mxu2 %v561_v4 }
  0x9d   :  { %321 = vmatpush.msra.mxu2 %v573_v7 }
  0x9f   :  { %322 = vmatpush.msra.mxu2 %v584_v9  ;;  %v118_v30 = vpop.f32.mrf.mxu3 }
  0xa0   :  { %v103_v38 = vpop.f32.mrf.mxu0  ;;  %v119_v62 = vadd.f32 %v628_v16, %v118_v30 }
  0xa1   :  { %v104_v39 = vadd.f32 %v628_v16, %v103_v38 }
  0xa7   :  { %v654_v31 = vpop.f32.mrf.mxu3 }
  0xa8   :  { %v106_v44 = vpop.f32.mrf.mxu0  ;;  %v122_v6 = vadd.f32 %v628_v16, %v654_v31 }
  0xa9   :  { %v107_v45 = vadd.f32 %v628_v16, %v106_v44 }
  0xb0   :  { %v109_v49 = vpop.f32.mrf.mxu0 }
  0xb1   :  { %v110_v50 = vadd.f32 %v628_v16, %v109_v49 }
 0x11b   :  { %v174_v25 = vpop.f32.mrf.mxu2 }
 0x11c   :  { %v177_v26 = vadd.f32 %v174_v25, %v98_v24 }
 0x11e   :  { %462 = vtanh.f32 %v177_v26 }
 0x124   :  { %v463_v27 = vpop.eup %462 }
 0x125   :  { %439 = vmatmul.msk.f32.vlgmr.msrb.gmra.mxu3 %vm128_vm2, %v463_v27 }
 0x126   :  { %344 = vmatpush.msrb.mxu3 %v552_v2 }
 0x128   :  { %345 = vmatpush.msrb.mxu3 %v561_v4 }
 0x12a   :  { %346 = vmatpush.msrb.mxu3 %v573_v7 }
 0x12c   :  { %347 = vmatpush.msrb.mxu3 %v584_v9 }
 0x1a8   :  { %v199_v34 = vpop.f32.mrf.mxu3 }
 0x1a9   :  { %v202_v35 = vadd.f32 %v199_v34, %v101_v33 }
 0x1ab   :  { %464 = vtanh.f32 %v202_v35 }
 0x1b1   :  { %v465_v36 = vpop.eup %464 }
 0x1b2   :  { %440 = vmatmul.msk.f32.vlgmr.msra.gmra.mxu1 %vm128_vm2, %v465_v36 }
 0x1b3   :  { %369 = vmatpush.msra.mxu1 %v552_v2  ;;  %v382_v2 = vld [vmem:[%s708_s4 + $0x18] sm:$0xff] }
 0x1b5   :  { %370 = vmatpush.msra.mxu1 %v561_v4  ;;  %v380_v4 = vld [vmem:[%s708_s4 + $0x8] sm:$0xff]  ;;  %s418_s4 = sshll.u32 %s710_s6, 4  ;;  %s419_s4 = int_to_ptr.hbm [resolvable:$true] %s418_s4 }
 0x1b7   :  { %371 = vmatpush.msra.mxu1 %v573_v7 }
 0x1b9   :  { %372 = vmatpush.msra.mxu1 %v584_v9 }
 0x22f   :  { %v224_v40 = vpop.f32.mrf.mxu1 }
 0x230   :  { %v227_v41 = vadd.f32 %v224_v40, %v104_v39 }
 0x232   :  { %466 = vtanh.f32 %v227_v41 }
 0x238   :  { %v467_v42 = vpop.eup %466 }
 0x239   :  { %441 = vmatmul.msk.f32.vlgmr.msrb.gmra.mxu2 %vm128_vm2, %v467_v42 }
 0x23a   :  { %402 = vmatpush.msrb.mxu2 %v382_v2 }
 0x23c   :  { %403 = vmatpush.msrb.mxu2 %v381_v3 }
 0x23e   :  { %404 = vmatpush.msrb.mxu2 %v380_v4 }
 0x240   :  { %405 = vmatpush.msrb.mxu2 %v379_v5 }
 0x2bc   :  { %v249_v46 = vpop.f32.mrf.mxu2 }
 0x2bd   :  { %v252_v47 = vadd.f32 %v249_v46, %v107_v45 }
 0x2bf   :  { %468 = vtanh.f32 %v252_v47 }
 0x2c5   :  { %v469_v48 = vpop.eup %468 }
 0x2c6   :  { %442 = vmatmul.msk.f32.vlgmr.msra.gmra.mxu3 %vm128_vm2, %v469_v48 }
 0x349   :  { %v274_v51 = vpop.f32.mrf.mxu3 }
 0x34a   :  { %v277_v52 = vadd.f32 %v274_v51, %v110_v50 }
 0x34c   :  { %470 = vtanh.f32 %v277_v52 }
 0x352   :  { %v471_v53 = vpop.eup %470 }
 0x353   :  { %443 = vmatmul.msk.f32.vlgmr.msrb.gmra.mxu1 %vm128_vm2, %v471_v53 }
 0x3d0   :  { %v299_v55 = vpop.f32.mrf.mxu1 }
 0x3d1   :  { %v302_v56 = vadd.f32 %v299_v55, %v113_v54 }
 0x3d3   :  { %472 = vtanh.f32 %v302_v56 }
 0x3d9   :  { %v473_v57 = vpop.eup %472 }
 0x3da   :  { %444 = vmatmul.msk.f32.vlgmr.msra.gmra.mxu2 %vm128_vm2, %v473_v57 }
 0x45d   :  { %v324_v59 = vpop.f32.mrf.mxu2 }
 0x45e   :  { %v327_v60 = vadd.f32 %v324_v59, %v116_v58 }
 0x460   :  { %474 = vtanh.f32 %v327_v60 }
 0x466   :  { %v475_v61 = vpop.eup %474 }
 0x467   :  { %445 = vmatmul.msk.f32.vlgmr.msrb.gmra.mxu3 %vm128_vm2, %v475_v61 }
 0x4ea   :  { %v349_v63 = vpop.f32.mrf.mxu3 }
 0x4eb   :  { %v352_v0 = vadd.f32 %v349_v63, %v119_v62 }
 0x4ed   :  { %476 = vtanh.f32 %v352_v0 }
 0x4f3   :  { %v477_v1 = vpop.eup %476 }
 0x4f4   :  { %446 = vmatmul.msk.f32.vlgmr.msra.gmra.mxu1 %vm128_vm2, %v477_v1 }
 0x571   :  { %v374_v7 = vpop.f32.mrf.mxu1 }
 0x572   :  { %v377_v8 = vadd.f32 %v374_v7, %v122_v6 }
 0x574   :  { %478 = vtanh.f32 %v377_v8 }
 0x57a   :  { %v479_v9 = vpop.eup %478 }
 0x57b   :  { %447 = vmatmul.msk.f32.vlgmr.msrb.gmra.mxu2 %vm128_vm2, %v479_v9 }
 0x5fe   :  { %v407_v11 = vpop.f32.mrf.mxu2 }
 0x5ff   :  { %v408_v12 = vadd.f32 %v459_v10, %v407_v11 }
 0x601   :  { %410 = vst [vmem:[#allocation2] sm:$0xff] %v408_v12 }
 0x602   :  { %421 = dma.vmem_to_hbm [thread:$0]  %s417_s16, 128, %s419_s4, [#allocation3]  }
 0x603   :  { %504 = dma.done.wait [#allocation3], 128  }
 0x604   :  { %505 = vsyncadd [#allocation3], 4294967168 }
 0x605   :  { %426 = vsyncpa [#allocation3], 1 }

</bundles_post_ra>
